<compile_context>
chip_gen: v5e
topology: v5e:2x2
jax: 0.10.0
libtpu: 0.0.40
codegen_flags: <defaults>
</compile_context>

<pallas_src>
import math
from typing import NamedTuple

import jax
import jax.numpy as jnp
from jax import lax
from jax.experimental import pallas as pl
from jax.experimental.pallas import tpu as pltpu

_LANE = 128


def _round_up(x, m):
    return ((x + m - 1) // m) * m


def _sublane_pack(dtype):
    # f32 -> 8, bf16 -> 16, int8/fp8 -> 32 (sub-32-bit dtypes pack along sublanes)
    return max(8, 32 // jnp.dtype(dtype).itemsize)


def _gelu_exact(x):
    # PyTorch nn.GELU() default (approximate='none'): 0.5*x*(1+erf(x/sqrt(2)))
    return 0.5 * x * (1.0 + lax.erf(x * (1.0 / math.sqrt(2.0))))


class EmbedParams(NamedTuple):
    w1: jax.Array   # (input_dim, emb_p)   lane-padded
    b1: jax.Array   # (1, emb_p)
    w2: jax.Array   # (emb_p, emb_p)
    b2: jax.Array   # (1, emb_p)
    input_dim: int
    emb_dim: int    # true (unpadded) output width


# --------------------------------------------------------------------------- kernel

def embed_kernel(x_ref, w1_ref, b1_ref, w2_ref, b2_ref, o_ref):
    # x_ref : (tm, K)   pipelined row tile of the flattened input
    # w1_ref: (K, Np)   whole first-layer weight, resident (single-buffered)
    # b1_ref: (1, Np)
    # w2_ref: (Np, Np)  whole second-layer weight, resident
    # b2_ref: (1, Np)
    # o_ref : (tm, Np)  lane-dense (Np is a multiple of 128) -> unmasked vst
    x = x_ref[...]
    if x.dtype != w1_ref.dtype:                      # trace-time branch
        x = x.astype(w1_ref.dtype)
    h = jnp.dot(x, w1_ref[...], preferred_element_type=jnp.float32)
    h = _gelu_exact(h + b1_ref[...].astype(jnp.float32))
    if w2_ref.dtype != jnp.float32:                  # keep bf16 weights on full-rate MXU
        h = h.astype(w2_ref.dtype)
    y = jnp.dot(h, w2_ref[...], preferred_element_type=jnp.float32)
    o_ref[...] = (y + b2_ref[...].astype(jnp.float32)).astype(o_ref.dtype)


# --------------------------------------------------------------------------- helpers

def _resident_spec(shape):
    """Constant-index (whole-resident) block; single-buffered where supported."""
    index_map = lambda i: (0,) * len(shape)
    try:
        return pl.BlockSpec(shape, index_map, pipeline_mode=pl.Buffered(1))
    except (TypeError, AttributeError):              # older jax without pipeline_mode
        return pl.BlockSpec(shape, index_map)


def _vmem_cap_bytes():
    """~80% of this generation's physical VMEM (v5e/v6e 128 MiB, v7x 64 MiB)."""
    cap = None
    try:
        cap = getattr(pltpu.get_tpu_info(), "vmem_capacity_bytes", None)
    except Exception:
        cap = None
    if not cap:
        cap = 64 << 20   # conservative fallback = v7x per-TC physical
    return int(cap * 0.8)


def _embed_xla(x2d, p: EmbedParams):
    """Small-n fallback: plain fused XLA expression (kernel overhead dominates here)."""
    h = jnp.dot(x2d, p.w1, preferred_element_type=jnp.float32) + p.b1.astype(jnp.float32)
    h = _gelu_exact(h)
    if p.w2.dtype != jnp.float32:
        h = h.astype(p.w2.dtype)
    y = jnp.dot(h, p.w2, preferred_element_type=jnp.float32) + p.b2.astype(jnp.float32)
    return y.astype(x2d.dtype)


# --------------------------------------------------------------------------- forward

def embed_forward(x, params: EmbedParams, *, tm=512, min_pallas_rows=1024,
                  return_padded=False):
    """Apply Embed to x (any leading shape; flattened to (-1, input_dim) like PyTorch)."""
    input_dim = params.input_dim
    emb_dim = params.emb_dim
    emb_p = params.w1.shape[1]                       # lane-padded width (multiple of 128)

    x2d = x.reshape(-1, input_dim)                   # PyTorch: x.view(-1, input_dim)
    n = x2d.shape[0]

    if n < min_pallas_rows:
        out = _embed_xla(x2d, params)
        return out if return_padded else out[:, :emb_dim]

    # Row tile: default 512 (better HBM streaming than 256), rounded to the dtype's
    # sublane pack so bf16/int8 tiles stay layout-legal, clamped for tiny inputs.
    pack = _sublane_pack(x.dtype)
    tm = _round_up(max(pack, min(tm, _round_up(n, pack))), pack)
    grid = (pl.cdiv(n, tm),)                         # partial last tile is masked by Pallas

    x_item = jnp.dtype(x.dtype).itemsize
    w_item = jnp.dtype(params.w1.dtype).itemsize
    # VMEM budget: double-buffered x/out tiles + single-buffered resident weights.
    vmem_bytes = (
        2 * tm * input_dim * x_item
        + 2 * tm * emb_p * x_item
        + (input_dim * emb_p + emb_p * emb_p + 2 * emb_p) * w_item
    )
    vmem_limit = int(min(max(vmem_bytes + (8 << 20), 32 << 20), _vmem_cap_bytes()))

    cost = pl.CostEstimate(
        flops=2 * n * (input_dim + emb_p) * emb_p,
        transcendentals=n * emb_p,                   # erf in the GELU
        bytes_accessed=n * (input_dim + emb_p) * x_item
        + (input_dim * emb_p + emb_p * emb_p + 2 * emb_p) * w_item,
    )

    out = pl.pallas_call(
        embed_kernel,
        out_shape=jax.ShapeDtypeStruct((n, emb_p), x.dtype),
        grid_spec=pltpu.PrefetchScalarGridSpec(
            num_scalar_prefetch=0,
            grid=grid,
            in_specs=[
                pl.BlockSpec((tm, input_dim), lambda i: (i, 0)),   # x row tile (pipelined)
                _resident_spec((input_dim, emb_p)),                # W1 (whole, resident)
                _resident_spec((1, emb_p)),                        # b1
                _resident_spec((emb_p, emb_p)),                    # W2 (whole, resident)
                _resident_spec((1, emb_p)),                        # b2
            ],
            out_specs=pl.BlockSpec((tm, emb_p), lambda i: (i, 0)),
        ),
        compiler_params=pltpu.CompilerParams(
            dimension_semantics=("parallel",),
            vmem_limit_bytes=vmem_limit,
        ),
        cost_estimate=cost,
    )(x2d, params.w1, params.b1, params.w2, params.b2)

    if return_padded or emb_p == emb_dim:
        return out
    return out[:, :emb_dim]


# --------------------------------------------------------------------------- params

def init_embed_params(key, input_dim, emb_dim, dtype=jnp.float32):
    """Deterministic init mimicking PyTorch nn.Linear defaults (unpadded)."""
    k1, k2, k3, k4 = jax.random.split(key, 4)
    bound1 = 1.0 / math.sqrt(input_dim)
    bound2 = 1.0 / math.sqrt(emb_dim)
    # stored as (in_features, out_features) so the kernel does x @ W
    w1 = jax.random.uniform(k1, (input_dim, emb_dim), dtype, -bound1, bound1)
    b1 = jax.random.uniform(k2, (1, emb_dim), dtype, -bound1, bound1)
    w2 = jax.random.uniform(k3, (emb_dim, emb_dim), dtype, -bound2, bound2)
    b2 = jax.random.uniform(k4, (1, emb_dim), dtype, -bound2, bound2)
    return w1, b1, w2, b2


def prepare_embed_params(raw_params) -> EmbedParams:
    """One-time lane padding of the weights (hoisted out of the per-call hot path)."""
    w1, b1, w2, b2 = raw_params
    input_dim, emb_dim = w1.shape
    emb_p = _round_up(emb_dim, _LANE)
    if emb_p != emb_dim:
        pad_c = emb_p - emb_dim
        w1 = jnp.pad(w1, ((0, 0), (0, pad_c)))
        b1 = jnp.pad(b1, ((0, 0), (0, pad_c)))
        w2 = jnp.pad(w2, ((0, pad_c), (0, pad_c)))
        b2 = jnp.pad(b2, ((0, 0), (0, pad_c)))
    return EmbedParams(w1, b1, w2, b2, input_dim, emb_dim)


def embed_reference(x, raw_params):
    w1, b1, w2, b2 = raw_params
    x2d = x.reshape(-1, w1.shape[0])
    h = x2d @ w1 + b1
    h = 0.5 * h * (1.0 + lax.erf(h / jnp.sqrt(2.0)))
    return h @ w2 + b2


# --------------------------------------------------------------------------- test

if __name__ == "__main__":
    input_dim = 8
    emb_dim = 32

    key = jax.random.PRNGKey(0)
    kx1, kx2, kx3, kp = jax.random.split(key, 4)
    raw_params = init_embed_params(kp, input_dim, emb_dim)
    params = prepare_embed_params(raw_params)        # pad once, outside the hot path

    # 1) shape matching the module's typical use: (2, 4, 8) -> flattened (8, 8)
    x_main = jax.random.normal(kx1, (2, 4, input_dim), dtype=jnp.float32)
    # 2) odd row count -> exercises the partial (masked) final row tile
    x_odd = jax.random.normal(kx2, (3, 5, input_dim), dtype=jnp.float32)
    # 3) multi-step grid with a partial last tile (1200 rows, tm=512 -> grid of 3)
    x_big = jax.random.normal(kx3, (1200, input_dim), dtype=jnp.float32)

    # Force the Pallas path (min_pallas_rows=0) so the kernel itself is exercised.
    for name, xin in (("main", x_main), ("odd", x_odd), ("big", x_big)):
        y = jax.block_until_ready(embed_forward(xin, params, min_pallas_rows=0))
        y_ref = embed_reference(xin, raw_params)
        assert y.shape == y_ref.shape, (name, y.shape, y_ref.shape)
        assert jnp.allclose(y, y_ref, atol=1e-5, rtol=1e-5), f"mismatch vs reference ({name})"

    # Default path: small inputs take the fused-XLA fallback (launch overhead dominates).
    y_fb = jax.block_until_ready(embed_forward(x_main, params))
    assert jnp.allclose(y_fb, embed_reference(x_main, raw_params), atol=1e-5, rtol=1e-5), \
        "mismatch vs reference (xla fallback)"

    print("KERNEL_OK")
</pallas_src>

<mosaic_0001>
module attributes {stable_mosaic.version = 11 : i64} {
  func.func @embed_kernel(%arg0: i32, %arg1: memref<8x8xf32, #tpu.memory_space<vmem>>, %arg2: memref<8x128xf32, #tpu.memory_space<vmem>>, %arg3: memref<1x128xf32, #tpu.memory_space<vmem>>, %arg4: memref<128x128xf32, #tpu.memory_space<vmem>>, %arg5: memref<1x128xf32, #tpu.memory_space<vmem>>, %arg6: memref<8x128xf32, #tpu.memory_space<vmem>>) attributes {dimension_semantics = [#tpu.dimension_semantics<parallel>], iteration_bounds = array<i64: 1>, scalar_prefetch = 0 : i64, scratch_operands = 0 : i64, tpu.core_type = #tpu.core_type<tc>, window_params = [{transform_indices = @transform_0, window_bounds = array<i64: 8, 8>}, {pipeline_mode = #tpu.pipeline_mode<synchronous>, transform_indices = @transform_1, window_bounds = array<i64: 8, 128>}, {pipeline_mode = #tpu.pipeline_mode<synchronous>, transform_indices = @transform_2, window_bounds = array<i64: 1, 128>}, {pipeline_mode = #tpu.pipeline_mode<synchronous>, transform_indices = @transform_3, window_bounds = array<i64: 128, 128>}, {pipeline_mode = #tpu.pipeline_mode<synchronous>, transform_indices = @transform_4, window_bounds = array<i64: 1, 128>}, {transform_indices = @transform_5, window_bounds = array<i64: 8, 128>}]} {
    %c0 = arith.constant 0 : index
    %c0_0 = arith.constant 0 : index
    %0 = vector.load %arg1[%c0, %c0_0] : memref<8x8xf32, #tpu.memory_space<vmem>>, vector<8x8xf32>
    %c0_1 = arith.constant 0 : index
    %c0_2 = arith.constant 0 : index
    %1 = vector.load %arg2[%c0_1, %c0_2] : memref<8x128xf32, #tpu.memory_space<vmem>>, vector<8x128xf32>
    %cst = arith.constant dense<0.000000e+00> : vector<8x128xf32>
    %2 = tpu.matmul %0, %1, %cst {dimension_numbers = #tpu.dot_dimension_numbers<[1], [0], [0], [1], [0, 0, 1, 1], [], []>} : vector<8x8xf32>, vector<8x128xf32>, vector<8x128xf32> -> vector<8x128xf32>
    %c0_3 = arith.constant 0 : index
    %c0_4 = arith.constant 0 : index
    %3 = vector.load %arg3[%c0_3, %c0_4] : memref<1x128xf32, #tpu.memory_space<vmem>>, vector<1x128xf32>
    %4 = vector.broadcast %3 : vector<1x128xf32> to vector<8x128xf32>
    %5 = arith.addf %2, %4 : vector<8x128xf32>
    %cst_5 = arith.constant 5.000000e-01 : f32
    %6 = vector.broadcast %cst_5 : f32 to vector<8x128xf32>
    %7 = arith.mulf %6, %5 : vector<8x128xf32>
    %cst_6 = arith.constant 0.707106769 : f32
    %8 = vector.broadcast %cst_6 : f32 to vector<8x128xf32>
    %9 = arith.mulf %5, %8 : vector<8x128xf32>
    %10 = math.erf %9 : vector<8x128xf32>
    %cst_7 = arith.constant 1.000000e+00 : f32
    %11 = vector.broadcast %cst_7 : f32 to vector<8x128xf32>
    %12 = arith.addf %11, %10 : vector<8x128xf32>
    %13 = arith.mulf %7, %12 : vector<8x128xf32>
    %c0_8 = arith.constant 0 : index
    %c0_9 = arith.constant 0 : index
    %14 = vector.load %arg4[%c0_8, %c0_9] : memref<128x128xf32, #tpu.memory_space<vmem>>, vector<128x128xf32>
    %cst_10 = arith.constant dense<0.000000e+00> : vector<8x128xf32>
    %15 = tpu.matmul %13, %14, %cst_10 {dimension_numbers = #tpu.dot_dimension_numbers<[1], [0], [0], [1], [0, 0, 1, 1], [], []>} : vector<8x128xf32>, vector<128x128xf32>, vector<8x128xf32> -> vector<8x128xf32>
    %c0_11 = arith.constant 0 : index
    %c0_12 = arith.constant 0 : index
    %16 = vector.load %arg5[%c0_11, %c0_12] : memref<1x128xf32, #tpu.memory_space<vmem>>, vector<1x128xf32>
    %17 = vector.broadcast %16 : vector<1x128xf32> to vector<8x128xf32>
    %18 = arith.addf %15, %17 : vector<8x128xf32>
    %c0_13 = arith.constant 0 : index
    %c0_14 = arith.constant 0 : index
    %19 = vector.load %arg6[%c0_13, %c0_14] : memref<8x128xf32, #tpu.memory_space<vmem>>, vector<8x128xf32>
    tpu.vector_store %arg6[%c0_13, %c0_14], %18 {strides = array<i32>} : memref<8x128xf32, #tpu.memory_space<vmem>>, vector<8x128xf32>,
    return
  }
  func.func @transform_0(%arg0: i32) -> (i32, i32) {
    %c0_i32 = arith.constant 0 : i32
    %c0_i32_0 = arith.constant 0 : i32
    return %arg0, %c0_i32 : i32, i32
  }
  func.func @transform_1(%arg0: i32) -> (i32, i32) {
    %c0_i32 = arith.constant 0 : i32
    %c0_i32_0 = arith.constant 0 : i32
    %c0_i32_1 = arith.constant 0 : i32
    return %c0_i32, %c0_i32_0 : i32, i32
  }
  func.func @transform_2(%arg0: i32) -> (i32, i32) {
    %c0_i32 = arith.constant 0 : i32
    %c0_i32_0 = arith.constant 0 : i32
    %c0_i32_1 = arith.constant 0 : i32
    return %c0_i32, %c0_i32_0 : i32, i32
  }
  func.func @transform_3(%arg0: i32) -> (i32, i32) {
    %c0_i32 = arith.constant 0 : i32
    %c0_i32_0 = arith.constant 0 : i32
    %c0_i32_1 = arith.constant 0 : i32
    return %c0_i32, %c0_i32_0 : i32, i32
  }
  func.func @transform_4(%arg0: i32) -> (i32, i32) {
    %c0_i32 = arith.constant 0 : i32
    %c0_i32_0 = arith.constant 0 : i32
    %c0_i32_1 = arith.constant 0 : i32
    return %c0_i32, %c0_i32_0 : i32, i32
  }
  func.func @transform_5(%arg0: i32) -> (i32, i32) {
    %c0_i32 = arith.constant 0 : i32
    %c0_i32_0 = arith.constant 0 : i32
    return %arg0, %c0_i32 : i32, i32
  }
}

</mosaic_0001>

<bundles_post_ra>
// kernel: tpu_custom_call.1
= control target key start
LH: loop header
LB: loop body
LE: loop exit
PB: predicated region body
PF: predicated region fallthrough
CT: control target
= control target key end

     0   :  { %10 = vsyncpa [#allocation3], 0  ;;  %s365_s0 = inlined_call_operand.hbm [shape: f32[8,8], index: 0, kind: input, shape index: {}]   ;;  %s366_s1 = inlined_call_operand.hbm [shape: f32[8,128], index: 1, kind: input, shape index: {}]   ;;  %s367_s2 = inlined_call_operand.vmem [shape: f32[1,128], index: 2, kind: input, shape index: {}]   ;;  %s368_s3 = inlined_call_operand.hbm [shape: f32[128,128], index: 3, kind: input, shape index: {}]   ;;  %s369_s4 = inlined_call_operand.vmem [shape: f32[1,128], index: 4, kind: input, shape index: {}]   ;;  %s370_s5 = inlined_call_operand.hbm [shape: f32[8,128], index: 5, kind: output, shape index: {}]  }
   0x1   :  { %11 = vsyncpa [#allocation6], 0  ;;  %s29_s20 = sshll.u32 %s366_s1, 4  ;;  %s30_s20 = int_to_ptr.hbm [resolvable:$true] %s29_s20 }
   0x2   :  { %12 = vsyncpa [#allocation4], 0  ;;  %s311_s21 = smov [#allocation5]   ;;  %s18_s25 = sshll.u32 %s365_s0, 4  ;;  %s19_s25 = int_to_ptr.hbm [resolvable:$true] %s18_s25 }
   0x3   :  { %s31_s22 = sshll.u32 %s311_s21, 4  ;;  %s312_s26 = smov [#allocation2]   ;;  %s32_s22 = int_to_ptr.vmem [resolvable:$true] %s31_s22 }
   0x4   :  { %34 = dma.hbm_to_vmem [thread:$0]  %s30_s20, 128, %s32_s22, [#allocation6]  }
   0x5   :  { %s20_s27 = sshll.u32 %s312_s26, 4  ;;  %s41_s30 = sshll.u32 %s368_s3, 4  ;;  %s21_s27 = int_to_ptr.vmem [resolvable:$true] %s20_s27  ;;  %s42_s30 = int_to_ptr.hbm [resolvable:$true] %s41_s30 }
   0x6   :  { %23 = dma.hbm_to_vmem [thread:$0]  %s19_s25, 128, %s21_s27, [#allocation3]  }
   0x7   :  { %s313_s1 = smov [#allocation7]   ;;  %s314_s7 = smov 128  }
   0x8   :  { %s43_s6 = sshll.u32 %s313_s1, 4  ;;  %s315_s8 = smov 8   ;;  %s44_s6 = int_to_ptr.vmem [resolvable:$true] %s43_s6 }
   0x9   :  { %49 = dma.hbm_to_vmem [thread:$0]  %s42_s30, 2048, %s44_s6, [#allocation6], %s314_s7, %s314_s7, %s315_s8  }
   0xa   :  { %305 = dma.done.wait [#allocation3], 128  }
   0xb   :  { %306 = vsyncadd [#allocation3], 4294967168 }
   0xc   :  { %307 = dma.done.wait [#allocation6], 2176  }
   0xd   :  { %308 = vsyncadd [#allocation6], 4294965120  ;;  %vm70_vm0 = vcmask 64512   ;;  %v65_v0 = vld [vmem:[#allocation5] sm:$0xff]  ;;  %v64_v1 = vld [vmem:[#allocation2] sm:$0xff]  ;;  %s316_s10 = smov [#allocation8]  }
   0xe   :  { %89 = vmatpush.msra.mxu0 %v65_v0  ;;  %v153_v2 = vld [vmem:[#allocation7 + $0x78] sm:$0xff]  ;;  %v152_v3 = vld [vmem:[#allocation7 + $0x70] sm:$0xff]  ;;  %v151_v4 = vld [vmem:[#allocation7 + $0x68] sm:$0xff]  ;;  %s184_s11 = sshll.u32 %s316_s10, 4  ;;  %s186_s14 = sshll.u32 %s370_s5, 4  ;;  %s185_s11 = int_to_ptr.vmem [resolvable:$true] %s184_s11  ;;  %s187_s14 = int_to_ptr.hbm [resolvable:$true] %s186_s14 }
   0xf   :  { %197 = vmatmul.msk.f32.vlgmr.msra.gmra.mxu0 %vm70_vm0, %v64_v1  ;;  %158 = vmatpush.msra.mxu1 %v153_v2  ;;  %v150_v5 = vld [vmem:[#allocation7 + $0x60] sm:$0xff]  ;;  %v205_v6 = vld [vmem:[%s367_s2] ss:$0 sm:$0xff]  ;;  %v149_v7 = vld [vmem:[#allocation7 + $0x58] sm:$0xff] }
  0x10   :  { %v148_v8 = vld [vmem:[#allocation7 + $0x50] sm:$0xff]  ;;  %v147_v10 = vld [vmem:[#allocation7 + $0x48] sm:$0xff]  ;;  %v146_v12 = vld [vmem:[#allocation7 + $0x40] sm:$0xff] }
  0x11   :  { %159 = vmatpush.msra.mxu1 %v152_v3  ;;  %v145_v14 = vld [vmem:[#allocation7 + $0x38] sm:$0xff]  ;;  %v144_v16 = vld [vmem:[#allocation7 + $0x30] sm:$0xff]  ;;  %v143_v18 = vld [vmem:[#allocation7 + $0x28] sm:$0xff] }
  0x12   :  { %v142_v21 = vld [vmem:[#allocation7 + $0x20] sm:$0xff]  ;;  %v141_v24 = vld [vmem:[#allocation7 + $0x18] sm:$0xff]  ;;  %v140_v27 = vld [vmem:[#allocation7 + $0x10] sm:$0xff] }
  0x13   :  { %160 = vmatpush.msra.mxu1 %v151_v4  ;;  %v139_v30 = vld [vmem:[#allocation7 + $0x8] sm:$0xff]  ;;  %v138_v32 = vld [vmem:[#allocation7] sm:$0xff]  ;;  %v206_v60 = vld [vmem:[%s369_s4] ss:$0 sm:$0xff] }
  0x15   :  { %161 = vmatpush.msra.mxu1 %v150_v5 }
  0x17   :  { %162 = vmatpush.msra.mxu1 %v149_v7 }
  0x19   :  { %163 = vmatpush.msra.mxu1 %v148_v8 }
  0x1b   :  { %164 = vmatpush.msra.mxu1 %v147_v10 }
  0x1d   :  { %165 = vmatpush.msra.mxu1 %v146_v12 }
  0x1f   :  { %166 = vmatpush.msra.mxu1 %v145_v14 }
  0x21   :  { %167 = vmatpush.msra.mxu1 %v144_v16 }
  0x23   :  { %168 = vmatpush.msra.mxu1 %v143_v18 }
  0x25   :  { %169 = vmatpush.msra.mxu1 %v142_v21 }
  0x27   :  { %170 = vmatpush.msra.mxu1 %v141_v24 }
  0x29   :  { %171 = vmatpush.msra.mxu1 %v140_v27 }
  0x2b   :  { %172 = vmatpush.msra.mxu1 %v139_v30 }
  0x2d   :  { %173 = vmatpush.msra.mxu1 %v138_v32 }
  0x8c   :  { %v91_v9 = vpop.f32.mrf.mxu0 }
  0x8d   :  { %v92_v11 = vadd.f32 %v205_v6, %v91_v9 }
  0x8f   :  { %v95_v13 = vmul.f32 0.70710677, %v92_v11  ;;  %v94_v57 = vmul.f32 0.5, %v92_v11 }
  0x91   :  { %v96_v15 = vmul.f32 %v95_v13, %v95_v13 }
  0x93   :  { %v97_v17 = vmin.f32 %v96_v15, 16.0 }
  0x95   :  { %v98_v19 = vmul.f32 2.1237322e-06, %v97_v17  ;;  %v109_v20 = vmul.f32 3.8918573e-05, %v97_v17 }
  0x97   :  { %v99_v22 = vadd.f32 0.00028619796, %v98_v19  ;;  %v110_v23 = vadd.f32 0.001143296, %v109_v20 }
  0x99   :  { %v100_v25 = vmul.f32 %v99_v22, %v97_v17  ;;  %v111_v26 = vmul.f32 %v110_v23, %v97_v17 }
  0x9b   :  { %v112_v28 = vadd.f32 0.014752088, %v111_v26  ;;  %v101_v29 = vadd.f32 0.0036580483, %v100_v25 }
  0x9d   :  { %v113_v31 = vmul.f32 %v112_v28, %v97_v17  ;;  %v102_v34 = vmul.f32 %v101_v29, %v97_v17 }
  0x9f   :  { %v114_v33 = vadd.f32 0.112945676, %v113_v31  ;;  %v103_v37 = vadd.f32 0.05243302, %v102_v34 }
  0xa1   :  { %v115_v35 = vmul.f32 %v114_v33, %v97_v17  ;;  %v104_v40 = vmul.f32 %v103_v37, %v97_v17 }
  0xa3   :  { %v116_v36 = vadd.f32 0.4994258, %v115_v35  ;;  %v105_v41 = vadd.f32 0.18741608, %v104_v40 }
  0xa5   :  { %v117_v38 = vmul.f32 %v116_v36, %v97_v17  ;;  %v106_v43 = vmul.f32 %v105_v41, %v97_v17 }
  0xa7   :  { %v118_v39 = vadd.f32 1.0, %v117_v38  ;;  %v107_v47 = vadd.f32 1.1283791, %v106_v43 }
  0xa9   :  { %207 = vrcp.f32 %v118_v39  ;;  %v130_v46 = vand.u32 2147483648, %v118_v39  ;;  %v128_v49 = vand.u32 2147483647, %v118_v39  ;;  %vm124_vm2 = vweird.f32 %v118_v39 }
  0xaa   :  { %v108_v52 = vmul.f32 %v107_v47, %v95_v13 }
  0xab   :  { %v131_v51 = vor.u32 1.1754944e-38, %v130_v46  ;;  %vm129_vm4 = vcmp.eq.f32.partialorder %v128_v49, 8.507059e+37 }
  0xaf   :  { %v208_v42 = vpop.eup %207 }
  0xb0   :  { %v120_v44 = vmul.f32 %v208_v42, %v118_v39  ;;  %vm125_vm1 = vweird.f32 %v208_v42 }
  0xb1   :  { %vm126_vm3 = vmor %vm124_vm2, %vm125_vm1 }
  0xb2   :  { %v121_v45 = vsub.f32 1.0, %v120_v44 }
  0xb4   :  { %v122_v48 = vmul.f32 %v208_v42, %v121_v45 }
  0xb6   :  { %v123_v50 = vadd.f32 %v208_v42, %v122_v48 }
  0xb8   :  { %v127_v53 = vsel %vm126_vm3, %v208_v42, %v123_v50 }
  0xb9   :  { %v132_v54 = vsel %vm129_vm4, %v131_v51, %v127_v53 }
  0xba   :  { %v133_v55 = vmul.f32 %v132_v54, %v108_v52 }
  0xbc   :  { %v198_v56 = vclamps-f32 %v133_v55, 1.0 }
  0xbe   :  { %v136_v58 = vadd.f32 1.0, %v198_v56 }
  0xc0   :  { %v137_v59 = vmul.f32 %v136_v58, %v94_v57 }
  0xc2   :  { %174 = vmatmul.f32.vlgmr.msra.gmra.mxu1 %v137_v59 }
 0x13f   :  { %v175_v61 = vpop.f32.mrf.mxu1 }
 0x140   :  { %v176_v62 = vadd.f32 %v206_v60, %v175_v61 }
 0x142   :  { %178 = vst [vmem:[#allocation8] sm:$0xff] %v176_v62 }
 0x143   :  { %189 = dma.vmem_to_hbm [thread:$0]  %s185_s11, 128, %s187_s14, [#allocation4]  }
 0x144   :  { %309 = dma.done.wait [#allocation4], 128  }
 0x145   :  { %310 = vsyncadd [#allocation4], 4294967168 }
 0x146   :  { %194 = vsyncpa [#allocation3], 1 }
 0x147   :  { %195 = vsyncpa [#allocation6], 1 }
 0x148   :  { %196 = vsyncpa [#allocation4], 1 }

</bundles_post_ra>
